<compile_context>
chip_gen: v5e
topology: v5e:2x2
jax: 0.10.0
libtpu: 0.0.40
codegen_flags: <defaults>
</compile_context>

<pallas_src>
import jax
import jax.numpy as jnp
from jax.experimental import pallas as pl
from jax.experimental.pallas import tpu as pltpu

EMBED_DIM = 32   # output_dim of the shared embedding net (fixed in the module)
OUT_PAD = 128    # lane-dense output width (action_dim is zero-padded to this)


# ----------------------------------------------------------------------------
# Kernel
# ----------------------------------------------------------------------------
def siamese_forward_kernel(
    sn_ref,                      # (2, tb, state_dim) f32: [0]=state, [1]=next_state
    w1_ref, b1_ref,              # net[0]:  Linear(state_dim, mid_dim)
    w2_ref, b2_ref,              # net[2]:  Linear(mid_dim, 32)
    w3a_ref, w3b_ref, b3_ref,    # action_predictor[0]: Linear(2*32, mid_dim), K-split
    w4_ref, b4_ref,              # action_predictor[2]: Linear(mid_dim, action_dim) padded to 128 cols
    out_ref,                     # (tb, OUT_PAD) f32
):
    tb = sn_ref.shape[1]
    d = sn_ref.shape[2]
    bf16 = jnp.bfloat16

    # Merge the (state, next_state) axis into the batch axis -> shared embedding
    # net runs ONCE on 2*tb rows.  Pure layout reshape (tb % 8 == 0), no copy.
    x = sn_ref[...].reshape(2 * tb, d)

    # Shared embedding net: Linear -> ReLU -> Linear -> ReLU
    # (bf16 MXU operands, f32 accumulation; bias add + ReLU stay f32 for v5e).
    h = jnp.dot(x.astype(bf16), w1_ref[...], preferred_element_type=jnp.float32)
    h = jnp.maximum(h + b1_ref[...], 0.0)
    z = jnp.dot(h.astype(bf16), w2_ref[...], preferred_element_type=jnp.float32)
    z = jnp.maximum(z + b2_ref[...], 0.0)                         # [2*tb, 32] f32

    state_emb = z[:tb].astype(bf16)   # rows 0:tb  -> embedding of `state`
    next_emb = z[tb:].astype(bf16)    # rows tb:   -> embedding of `next_state`

    # cat((state_emb, next_emb), dim=1) @ w3 == state_emb @ w3[:32] + next_emb @ w3[32:]
    h2 = (jnp.dot(state_emb, w3a_ref[...], preferred_element_type=jnp.float32)
          + jnp.dot(next_emb, w3b_ref[...], preferred_element_type=jnp.float32))
    h2 = jnp.maximum(h2 + b3_ref[...], 0.0)

    # Final layer: padded to 128 output lanes -> unmasked, lane-dense store.
    out = jnp.dot(h2.astype(bf16), w4_ref[...], preferred_element_type=jnp.float32)
    out_ref[...] = (out + b4_ref[...]).astype(out_ref.dtype)


# ----------------------------------------------------------------------------
# Param / tiling helpers
# ----------------------------------------------------------------------------
def _round_up(x, m):
    return (x + m - 1) // m * m


def prepare_params(p):
    """Kernel-ready params: bf16 [in, out] weights (halves weight DMA bytes),
    w3 pre-split on its K dim (concat order = [state_emb, next_state_emb]),
    f32 [1, out] biases, and the final layer zero-padded to 128 output lanes
    so the kernel's output store is lane-dense."""
    bf16 = jnp.bfloat16
    mid_dim, action_dim = p["w4"].shape
    out_pad = max(OUT_PAD, _round_up(action_dim, 128))

    w4p = jnp.zeros((mid_dim, out_pad), bf16).at[:, :action_dim].set(p["w4"].astype(bf16))
    b4p = jnp.zeros((1, out_pad), jnp.float32).at[:, :action_dim].set(p["b4"])

    return dict(
        w1=p["w1"].astype(bf16), b1=p["b1"],
        w2=p["w2"].astype(bf16), b2=p["b2"],
        w3a=p["w3"][:EMBED_DIM].astype(bf16),   # multiplies the `state` embedding
        w3b=p["w3"][EMBED_DIM:].astype(bf16),   # multiplies the `next_state` embedding
        b3=p["b3"],
        w4=w4p, b4=b4p,
        action_dim=action_dim,
    )


def _choose_tiling(B, min_rows=256, max_tile=1024):
    """Return (tile_rows, num_tiles, padded_batch).

    - tiles are always multiples of 8 (sublane-aligned slices / reshape);
    - nb >= 2 whenever B is big enough, so v7x's two TensorCores both get work;
    - tiles capped at `max_tile` rows: intermediates are lane-padded to 128, so
      a 1024-row tile stays at a few MiB — far under the 32 MiB scoped-VMEM
      default on every generation (no vmem_limit_bytes bump needed).
    """
    b8 = _round_up(B, 8)
    if b8 <= min_rows:
        # Tiny batch: one tile; per-grid-step overhead (~0.35 us) would dominate.
        return b8, 1, b8
    tb = min(max_tile, _round_up(-(-b8 // 2), 8))
    nb = -(-b8 // tb)
    return tb, nb, nb * tb


# ----------------------------------------------------------------------------
# Wrapper
# ----------------------------------------------------------------------------
def siamese_forward(state, next_state, kp):
    B, state_dim = state.shape
    mid_dim = kp["w1"].shape[1]
    out_pad = kp["w4"].shape[1]
    action_dim = kp["action_dim"]

    tb, nb, b_pad = _choose_tiling(B)

    if b_pad != B:
        pad = ((0, b_pad - B), (0, 0))
        state = jnp.pad(state, pad)
        next_state = jnp.pad(next_state, pad)
    sn = jnp.stack([state, next_state], axis=0)          # (2, b_pad, state_dim)

    def const_spec(shape):
        return pl.BlockSpec(shape, lambda i: (0,) * len(shape))  # VMEM-resident

    in_specs = [
        pl.BlockSpec((2, tb, state_dim), lambda i: (0, i, 0)),   # stacked inputs
        const_spec(kp["w1"].shape), const_spec(kp["b1"].shape),
        const_spec(kp["w2"].shape), const_spec(kp["b2"].shape),
        const_spec(kp["w3a"].shape), const_spec(kp["w3b"].shape), const_spec(kp["b3"].shape),
        const_spec(kp["w4"].shape), const_spec(kp["b4"].shape),
    ]
    out_spec = pl.BlockSpec((tb, out_pad), lambda i: (i, 0))

    flops = 2 * b_pad * (2 * state_dim * mid_dim          # embedding layer 1 (both states)
                         + 2 * mid_dim * EMBED_DIM        # embedding layer 2 (both states)
                         + 2 * EMBED_DIM * mid_dim        # action_predictor layer 1 (K-split)
                         + mid_dim * out_pad)             # action_predictor layer 2 (padded)
    weight_bytes = 2 * (state_dim * mid_dim + mid_dim * EMBED_DIM
                        + 2 * EMBED_DIM * mid_dim + mid_dim * out_pad)   # bf16
    bias_bytes = 4 * (2 * mid_dim + EMBED_DIM + out_pad)
    io_bytes = 4 * (2 * b_pad * state_dim + b_pad * out_pad)
    cost = pl.CostEstimate(flops=flops, transcendentals=0,
                           bytes_accessed=weight_bytes + bias_bytes + io_bytes)

    out_padded = pl.pallas_call(
        siamese_forward_kernel,
        out_shape=jax.ShapeDtypeStruct((b_pad, out_pad), jnp.float32),
        grid_spec=pltpu.PrefetchScalarGridSpec(
            num_scalar_prefetch=0,
            grid=(nb,),
            in_specs=in_specs,
            out_specs=out_spec,
        ),
        compiler_params=pltpu.CompilerParams(dimension_semantics=("parallel",)),
        cost_estimate=cost,
    )(sn,
      kp["w1"], kp["b1"], kp["w2"], kp["b2"],
      kp["w3a"], kp["w3b"], kp["b3"], kp["w4"], kp["b4"])

    return out_padded[:B, :action_dim]


# ----------------------------------------------------------------------------
# Init + references
# ----------------------------------------------------------------------------
def init_params(key, mid_dim, state_dim, action_dim, output_dim=EMBED_DIM):
    """Deterministic synthetic init. Weights stored as [in, out] (transposed
    vs. PyTorch) so the kernel computes x @ W + b directly."""
    ks = jax.random.split(key, 8)

    def lin(kw, kb, fan_in, fan_out):
        bound = 1.0 / jnp.sqrt(float(fan_in))
        w = jax.random.uniform(kw, (fan_in, fan_out), jnp.float32, -bound, bound)
        b = jax.random.uniform(kb, (1, fan_out), jnp.float32, -bound, bound)
        return w, b

    w1, b1 = lin(ks[0], ks[1], state_dim, mid_dim)
    w2, b2 = lin(ks[2], ks[3], mid_dim, output_dim)
    w3, b3 = lin(ks[4], ks[5], state_dim * 2, mid_dim)
    w4, b4 = lin(ks[6], ks[7], mid_dim, action_dim)
    return dict(w1=w1, b1=b1, w2=w2, b2=b2, w3=w3, b3=b3, w4=w4, b4=b4)


def reference_forward_f32(state, next_state, p):
    """Plain-JAX f32 reference mirroring the PyTorch forward exactly."""
    def embed(x):
        h = jnp.maximum(x @ p["w1"] + p["b1"], 0.0)
        return jnp.maximum(h @ p["w2"] + p["b2"], 0.0)

    tmp = jnp.concatenate([embed(state), embed(next_state)], axis=1)
    h = jnp.maximum(tmp @ p["w3"] + p["b3"], 0.0)
    return h @ p["w4"] + p["b4"]


def reference_forward_bf16(state, next_state, p):
    """Numerics-matched reference: bf16 MXU operands, f32 accumulation,
    same K-split of w3 as the kernel."""
    bf16 = jnp.bfloat16

    def dot(x, w):
        return jnp.dot(x.astype(bf16), w.astype(bf16),
                       preferred_element_type=jnp.float32)

    def embed(x):
        h = jnp.maximum(dot(x, p["w1"]) + p["b1"], 0.0)
        return jnp.maximum(dot(h, p["w2"]) + p["b2"], 0.0)

    s, n = embed(state), embed(next_state)
    h = jnp.maximum(dot(s, p["w3"][:EMBED_DIM]) + dot(n, p["w3"][EMBED_DIM:]) + p["b3"], 0.0)
    return dot(h, p["w4"]) + p["b4"]


if __name__ == "__main__":
    # NOTE: the original module concatenates two 32-dim embeddings but feeds
    # action_predictor(Linear(state_dim*2, ...)); this only type-checks when
    # state_dim == 32 (== output_dim), so we pick state_dim = 32.
    B = 8
    state_dim = 32
    mid_dim = 64
    action_dim = 8

    key = jax.random.PRNGKey(0)
    k_state, k_next, k_params = jax.random.split(key, 3)

    state = jax.random.normal(k_state, (B, state_dim), jnp.float32)
    next_state = jax.random.normal(k_next, (B, state_dim), jnp.float32)

    params = init_params(k_params, mid_dim, state_dim, action_dim)
    kparams = prepare_params(params)

    out = siamese_forward(state, next_state, kparams)
    out = jax.block_until_ready(out)

    ref_match = reference_forward_bf16(state, next_state, params)   # same bf16 numerics
    ref_f32 = reference_forward_f32(state, next_state, params)      # exact module numerics

    assert out.shape == (B, action_dim)
    assert jnp.allclose(out, ref_match, atol=1e-4, rtol=1e-4), \
        float(jnp.max(jnp.abs(out - ref_match)))
    # bf16 MXU inputs loosen the tolerance vs. the pure-f32 reference.
    assert jnp.allclose(out, ref_f32, atol=1e-1, rtol=1e-1), \
        float(jnp.max(jnp.abs(out - ref_f32)))

    print("KERNEL_OK")
</pallas_src>

<mosaic_0001>
module attributes {stable_mosaic.version = 11 : i64} {
  func.func @siamese_forward_kernel(%arg0: i32, %arg1: memref<2x8x32xf32, #tpu.memory_space<vmem>>, %arg2: memref<32x64xbf16, #tpu.memory_space<vmem>>, %arg3: memref<1x64xf32, #tpu.memory_space<vmem>>, %arg4: memref<64x32xbf16, #tpu.memory_space<vmem>>, %arg5: memref<1x32xf32, #tpu.memory_space<vmem>>, %arg6: memref<32x64xbf16, #tpu.memory_space<vmem>>, %arg7: memref<32x64xbf16, #tpu.memory_space<vmem>>, %arg8: memref<1x64xf32, #tpu.memory_space<vmem>>, %arg9: memref<64x128xbf16, #tpu.memory_space<vmem>>, %arg10: memref<1x128xf32, #tpu.memory_space<vmem>>, %arg11: memref<8x128xf32, #tpu.memory_space<vmem>>) attributes {dimension_semantics = [#tpu.dimension_semantics<parallel>], iteration_bounds = array<i64: 1>, scalar_prefetch = 0 : i64, scratch_operands = 0 : i64, tpu.core_type = #tpu.core_type<tc>, window_params = [{transform_indices = @transform_0, window_bounds = array<i64: 2, 8, 32>}, {pipeline_mode = #tpu.pipeline_mode<synchronous>, transform_indices = @transform_1, window_bounds = array<i64: 32, 64>}, {pipeline_mode = #tpu.pipeline_mode<synchronous>, transform_indices = @transform_2, window_bounds = array<i64: 1, 64>}, {pipeline_mode = #tpu.pipeline_mode<synchronous>, transform_indices = @transform_3, window_bounds = array<i64: 64, 32>}, {pipeline_mode = #tpu.pipeline_mode<synchronous>, transform_indices = @transform_4, window_bounds = array<i64: 1, 32>}, {pipeline_mode = #tpu.pipeline_mode<synchronous>, transform_indices = @transform_5, window_bounds = array<i64: 32, 64>}, {pipeline_mode = #tpu.pipeline_mode<synchronous>, transform_indices = @transform_6, window_bounds = array<i64: 32, 64>}, {pipeline_mode = #tpu.pipeline_mode<synchronous>, transform_indices = @transform_7, window_bounds = array<i64: 1, 64>}, {pipeline_mode = #tpu.pipeline_mode<synchronous>, transform_indices = @transform_8, window_bounds = array<i64: 64, 128>}, {pipeline_mode = #tpu.pipeline_mode<synchronous>, transform_indices = @transform_9, window_bounds = array<i64: 1, 128>}, {transform_indices = @transform_10, window_bounds = array<i64: 8, 128>}]} {
    %c0 = arith.constant 0 : index
    %c0_0 = arith.constant 0 : index
    %c0_1 = arith.constant 0 : index
    %0 = vector.load %arg1[%c0, %c0_0, %c0_1] : memref<2x8x32xf32, #tpu.memory_space<vmem>>, vector<2x8x32xf32>
    %1 = vector.shape_cast %0 : vector<2x8x32xf32> to vector<16x32xf32>
    %2 = arith.truncf %1 : vector<16x32xf32> to vector<16x32xbf16>
    %c0_2 = arith.constant 0 : index
    %c0_3 = arith.constant 0 : index
    %3 = vector.load %arg2[%c0_2, %c0_3] : memref<32x64xbf16, #tpu.memory_space<vmem>>, vector<32x64xbf16>
    %cst = arith.constant dense<0.000000e+00> : vector<16x64xf32>
    %4 = tpu.matmul %2, %3, %cst {dimension_numbers = #tpu.dot_dimension_numbers<[1], [0], [0], [1], [0, 0, 1, 1], [], []>} : vector<16x32xbf16>, vector<32x64xbf16>, vector<16x64xf32> -> vector<16x64xf32>
    %c0_4 = arith.constant 0 : index
    %c0_5 = arith.constant 0 : index
    %5 = vector.load %arg3[%c0_4, %c0_5] : memref<1x64xf32, #tpu.memory_space<vmem>>, vector<1x64xf32>
    %6 = vector.broadcast %5 : vector<1x64xf32> to vector<16x64xf32>
    %7 = arith.addf %4, %6 : vector<16x64xf32>
    %cst_6 = arith.constant 0.000000e+00 : f32
    %8 = vector.broadcast %cst_6 : f32 to vector<16x64xf32>
    %9 = arith.maximumf %7, %8 : vector<16x64xf32>
    %10 = arith.truncf %9 : vector<16x64xf32> to vector<16x64xbf16>
    %c0_7 = arith.constant 0 : index
    %c0_8 = arith.constant 0 : index
    %11 = vector.load %arg4[%c0_7, %c0_8] : memref<64x32xbf16, #tpu.memory_space<vmem>>, vector<64x32xbf16>
    %cst_9 = arith.constant dense<0.000000e+00> : vector<16x32xf32>
    %12 = tpu.matmul %10, %11, %cst_9 {dimension_numbers = #tpu.dot_dimension_numbers<[1], [0], [0], [1], [0, 0, 1, 1], [], []>} : vector<16x64xbf16>, vector<64x32xbf16>, vector<16x32xf32> -> vector<16x32xf32>
    %c0_10 = arith.constant 0 : index
    %c0_11 = arith.constant 0 : index
    %13 = vector.load %arg5[%c0_10, %c0_11] : memref<1x32xf32, #tpu.memory_space<vmem>>, vector<1x32xf32>
    %14 = vector.broadcast %13 : vector<1x32xf32> to vector<16x32xf32>
    %15 = arith.addf %12, %14 : vector<16x32xf32>
    %cst_12 = arith.constant 0.000000e+00 : f32
    %16 = vector.broadcast %cst_12 : f32 to vector<16x32xf32>
    %17 = arith.maximumf %15, %16 : vector<16x32xf32>
    %18 = vector.extract_strided_slice %17 {offsets = [0, 0], sizes = [8, 32], strides = [1, 1]} : vector<16x32xf32> to vector<8x32xf32>
    %19 = arith.truncf %18 : vector<8x32xf32> to vector<8x32xbf16>
    %20 = vector.extract_strided_slice %17 {offsets = [8, 0], sizes = [8, 32], strides = [1, 1]} : vector<16x32xf32> to vector<8x32xf32>
    %21 = arith.truncf %20 : vector<8x32xf32> to vector<8x32xbf16>
    %c0_13 = arith.constant 0 : index
    %c0_14 = arith.constant 0 : index
    %22 = vector.load %arg6[%c0_13, %c0_14] : memref<32x64xbf16, #tpu.memory_space<vmem>>, vector<32x64xbf16>
    %cst_15 = arith.constant dense<0.000000e+00> : vector<8x64xf32>
    %23 = tpu.matmul %19, %22, %cst_15 {dimension_numbers = #tpu.dot_dimension_numbers<[1], [0], [0], [1], [0, 0, 1, 1], [], []>} : vector<8x32xbf16>, vector<32x64xbf16>, vector<8x64xf32> -> vector<8x64xf32>
    %c0_16 = arith.constant 0 : index
    %c0_17 = arith.constant 0 : index
    %24 = vector.load %arg7[%c0_16, %c0_17] : memref<32x64xbf16, #tpu.memory_space<vmem>>, vector<32x64xbf16>
    %cst_18 = arith.constant dense<0.000000e+00> : vector<8x64xf32>
    %25 = tpu.matmul %21, %24, %cst_18 {dimension_numbers = #tpu.dot_dimension_numbers<[1], [0], [0], [1], [0, 0, 1, 1], [], []>} : vector<8x32xbf16>, vector<32x64xbf16>, vector<8x64xf32> -> vector<8x64xf32>
    %26 = arith.addf %23, %25 : vector<8x64xf32>
    %c0_19 = arith.constant 0 : index
    %c0_20 = arith.constant 0 : index
    %27 = vector.load %arg8[%c0_19, %c0_20] : memref<1x64xf32, #tpu.memory_space<vmem>>, vector<1x64xf32>
    %28 = vector.broadcast %27 : vector<1x64xf32> to vector<8x64xf32>
    %29 = arith.addf %26, %28 : vector<8x64xf32>
    %cst_21 = arith.constant 0.000000e+00 : f32
    %30 = vector.broadcast %cst_21 : f32 to vector<8x64xf32>
    %31 = arith.maximumf %29, %30 : vector<8x64xf32>
    %32 = arith.truncf %31 : vector<8x64xf32> to vector<8x64xbf16>
    %c0_22 = arith.constant 0 : index
    %c0_23 = arith.constant 0 : index
    %33 = vector.load %arg9[%c0_22, %c0_23] : memref<64x128xbf16, #tpu.memory_space<vmem>>, vector<64x128xbf16>
    %cst_24 = arith.constant dense<0.000000e+00> : vector<8x128xf32>
    %34 = tpu.matmul %32, %33, %cst_24 {dimension_numbers = #tpu.dot_dimension_numbers<[1], [0], [0], [1], [0, 0, 1, 1], [], []>} : vector<8x64xbf16>, vector<64x128xbf16>, vector<8x128xf32> -> vector<8x128xf32>
    %c0_25 = arith.constant 0 : index
    %c0_26 = arith.constant 0 : index
    %35 = vector.load %arg10[%c0_25, %c0_26] : memref<1x128xf32, #tpu.memory_space<vmem>>, vector<1x128xf32>
    %36 = vector.broadcast %35 : vector<1x128xf32> to vector<8x128xf32>
    %37 = arith.addf %34, %36 : vector<8x128xf32>
    %c0_27 = arith.constant 0 : index
    %c0_28 = arith.constant 0 : index
    %38 = vector.load %arg11[%c0_27, %c0_28] : memref<8x128xf32, #tpu.memory_space<vmem>>, vector<8x128xf32>
    tpu.vector_store %arg11[%c0_27, %c0_28], %37 {strides = array<i32>} : memref<8x128xf32, #tpu.memory_space<vmem>>, vector<8x128xf32>,
    return
  }
  func.func @transform_0(%arg0: i32) -> (i32, i32, i32) {
    %c0_i32 = arith.constant 0 : i32
    %c0_i32_0 = arith.constant 0 : i32
    %c0_i32_1 = arith.constant 0 : i32
    return %c0_i32, %arg0, %c0_i32_0 : i32, i32, i32
  }
  func.func @transform_1(%arg0: i32) -> (i32, i32) {
    %c0_i32 = arith.constant 0 : i32
    %c0_i32_0 = arith.constant 0 : i32
    %c0_i32_1 = arith.constant 0 : i32
    return %c0_i32, %c0_i32_0 : i32, i32
  }
  func.func @transform_2(%arg0: i32) -> (i32, i32) {
    %c0_i32 = arith.constant 0 : i32
    %c0_i32_0 = arith.constant 0 : i32
    %c0_i32_1 = arith.constant 0 : i32
    return %c0_i32, %c0_i32_0 : i32, i32
  }
  func.func @transform_3(%arg0: i32) -> (i32, i32) {
    %c0_i32 = arith.constant 0 : i32
    %c0_i32_0 = arith.constant 0 : i32
    %c0_i32_1 = arith.constant 0 : i32
    return %c0_i32, %c0_i32_0 : i32, i32
  }
  func.func @transform_4(%arg0: i32) -> (i32, i32) {
    %c0_i32 = arith.constant 0 : i32
    %c0_i32_0 = arith.constant 0 : i32
    %c0_i32_1 = arith.constant 0 : i32
    return %c0_i32, %c0_i32_0 : i32, i32
  }
  func.func @transform_5(%arg0: i32) -> (i32, i32) {
    %c0_i32 = arith.constant 0 : i32
    %c0_i32_0 = arith.constant 0 : i32
    %c0_i32_1 = arith.constant 0 : i32
    return %c0_i32, %c0_i32_0 : i32, i32
  }
  func.func @transform_6(%arg0: i32) -> (i32, i32) {
    %c0_i32 = arith.constant 0 : i32
    %c0_i32_0 = arith.constant 0 : i32
    %c0_i32_1 = arith.constant 0 : i32
    return %c0_i32, %c0_i32_0 : i32, i32
  }
  func.func @transform_7(%arg0: i32) -> (i32, i32) {
    %c0_i32 = arith.constant 0 : i32
    %c0_i32_0 = arith.constant 0 : i32
    %c0_i32_1 = arith.constant 0 : i32
    return %c0_i32, %c0_i32_0 : i32, i32
  }
  func.func @transform_8(%arg0: i32) -> (i32, i32) {
    %c0_i32 = arith.constant 0 : i32
    %c0_i32_0 = arith.constant 0 : i32
    %c0_i32_1 = arith.constant 0 : i32
    return %c0_i32, %c0_i32_0 : i32, i32
  }
  func.func @transform_9(%arg0: i32) -> (i32, i32) {
    %c0_i32 = arith.constant 0 : i32
    %c0_i32_0 = arith.constant 0 : i32
    %c0_i32_1 = arith.constant 0 : i32
    return %c0_i32, %c0_i32_0 : i32, i32
  }
  func.func @transform_10(%arg0: i32) -> (i32, i32) {
    %c0_i32 = arith.constant 0 : i32
    %c0_i32_0 = arith.constant 0 : i32
    return %arg0, %c0_i32 : i32, i32
  }
}

</mosaic_0001>

<bundles_post_ra>
// kernel: tpu_custom_call.1
= control target key start
LH: loop header
LB: loop body
LE: loop exit
PB: predicated region body
PF: predicated region fallthrough
CT: control target
= control target key end

     0   :  { %15 = vsyncpa [#allocation3], 0  ;;  %s635_s0 = inlined_call_operand.vmem [shape: f32[2,8,32], index: 0, kind: input, shape index: {}]   ;;  %s636_s1 = inlined_call_operand.hbm [shape: bf16[32,64], index: 1, kind: input, shape index: {}]   ;;  %s637_s2 = inlined_call_operand.vmem [shape: f32[1,64], index: 2, kind: input, shape index: {}]   ;;  %s638_s3 = inlined_call_operand.vmem [shape: bf16[64,32], index: 3, kind: input, shape index: {}]   ;;  %s639_s4 = inlined_call_operand.vmem [shape: f32[1,32], index: 4, kind: input, shape index: {}]   ;;  %s640_s5 = inlined_call_operand.hbm [shape: bf16[32,64], index: 5, kind: input, shape index: {}]   ;;  %s641_s6 = inlined_call_operand.hbm [shape: bf16[32,64], index: 6, kind: input, shape index: {}]   ;;  %s642_s7 = inlined_call_operand.vmem [shape: f32[1,64], index: 7, kind: input, shape index: {}]   ;;  %s643_s8 = inlined_call_operand.vmem [shape: bf16[64,128], index: 8, kind: input, shape index: {}]   ;;  %s644_s9 = inlined_call_operand.vmem [shape: f32[1,128], index: 9, kind: input, shape index: {}]   ;;  %s645_s10 = inlined_call_operand.hbm [shape: f32[8,128], index: 10, kind: output, shape index: {}]  }
   0x1   :  { %16 = vsyncpa [#allocation6], 0 }
   0x2   :  { %17 = vsyncpa [#allocation4], 0  ;;  %s43_s15 = sshll.u32 %s640_s5, 4  ;;  %s515_s16 = smov [#allocation5]   ;;  %s44_s15 = int_to_ptr.hbm [resolvable:$true] %s43_s15 }
   0x3   :  { %s45_s17 = sshll.u32 %s515_s16, 4  ;;  %s24_s20 = sshll.u32 %s636_s1, 4  ;;  %s46_s17 = int_to_ptr.vmem [resolvable:$true] %s45_s17  ;;  %s25_s20 = int_to_ptr.hbm [resolvable:$true] %s24_s20 }
   0x4   :  { %s516_s21 = smov 64   ;;  %s517_s22 = smov 4  }
   0x5   :  { %51 = dma.hbm_to_vmem [thread:$0]  %s44_s15, 256, %s46_s17, [#allocation6], %s516_s21, %s516_s21, %s517_s22  }
   0x6   :  { %s518_s23 = smov [#allocation2]   ;;  %s56_s27 = sshll.u32 %s641_s6, 4  ;;  %s57_s27 = int_to_ptr.hbm [resolvable:$true] %s56_s27 }
   0x7   :  { %s26_s24 = sshll.u32 %s518_s23, 4  ;;  %s519_s5 = smov [#allocation7]   ;;  %s27_s24 = int_to_ptr.vmem [resolvable:$true] %s26_s24 }
   0x8   :  { %32 = dma.hbm_to_vmem [thread:$0]  %s25_s20, 256, %s27_s24, [#allocation3], %s516_s21, %s516_s21, %s517_s22  }
   0x9   :  { %s58_s28 = sshll.u32 %s519_s5, 4  ;;  %s59_s28 = int_to_ptr.vmem [resolvable:$true] %s58_s28 }
   0xa   :  { %64 = dma.hbm_to_vmem [thread:$0]  %s57_s27, 256, %s59_s28, [#allocation6], %s516_s21, %s516_s21, %s517_s22  }
   0xb   :  { %509 = dma.done.wait [#allocation3], 256  }
   0xc   :  { %510 = vsyncadd [#allocation3], 4294967040 }
   0xd   :  { %511 = dma.done.wait [#allocation6], 512  }
   0xe   :  { %512 = vsyncadd [#allocation6], 4294966784  ;;  %v390_v0 = vld [vmem:[#allocation2 + $0x8] sm:$0xff]  ;;  %v389_v1 = vld [vmem:[#allocation2] sm:$0xff]  ;;  %vm107_vm0 = vcmask 261120   ;;  %vm164_vm1 = vcmask 523264  }
   0xf   :  { %v84_v2 = vld [vmem:[%s635_s0] sm:$0xff]  ;;  %v85_v3 = vld [vmem:[%s635_s0 + $0x8] sm:$0xff]  ;;  %117 = vmatpush.bf16.msra.mxu0 %v390_v0  ;;  %v394_v5 = vld [vmem:[%s638_s3 + $0x18] sm:$0xff]  ;;  %s317_s6 = sshll.u32 %s645_s10, 4  ;;  %s318_s6 = int_to_ptr.hbm [resolvable:$true] %s317_s6 }
  0x10   :  { %v86_v4 = vpack.c.bf16 %v85_v3, %v84_v2  ;;  %172 = vmatpush.bf16.msra.mxu1 %v394_v5  ;;  %v393_v6 = vld [vmem:[%s638_s3 + $0x10] sm:$0xff]  ;;  %v392_v7 = vld [vmem:[%s638_s3 + $0x8] sm:$0xff]  ;;  %v391_v8 = vld [vmem:[%s638_s3] sm:$0xff] }
  0x11   :  { %v409_v10 = vld [vmem:[%s637_s2] ss:$0 sm:$0xff]  ;;  %v396_v17 = vld [vmem:[#allocation5 + $0x8] sm:$0xff]  ;;  %v395_v18 = vld [vmem:[#allocation5] sm:$0xff] }
  0x12   :  { %243 = vmatpush.bf16.msra.mxu3 %v396_v17  ;;  %v398_v19 = vld [vmem:[#allocation7 + $0x8] sm:$0xff]  ;;  %v397_v20 = vld [vmem:[#allocation7] sm:$0xff]  ;;  %v402_v30 = vld [vmem:[%s643_s8 + $0x18] sm:$0xff] }
  0x13   :  { %118 = vmatpush.bf16.msra.mxu0 %v389_v1  ;;  %215 = vmatpush.bf16.msra.mxu2 %v398_v19  ;;  %v410_v21 = vld [vmem:[%s639_s4] ss:$0 sm:$0xff]  ;;  %v401_v31 = vld [vmem:[%s643_s8 + $0x10] sm:$0xff]  ;;  %v400_v32 = vld [vmem:[%s643_s8 + $0x8] sm:$0xff] }
  0x14   :  { %173 = vmatpush.bf16.msra.mxu1 %v393_v6  ;;  %v399_v33 = vld [vmem:[%s643_s8] sm:$0xff]  ;;  %s520_s8 = smov [#allocation8]  }
  0x15   :  { %v411_v35 = vld [vmem:[%s642_s7] ss:$0 sm:$0xff]  ;;  %s315_s29 = sshll.u32 %s520_s8, 4  ;;  %s316_s29 = int_to_ptr.vmem [resolvable:$true] %s315_s29 }
  0x16   :  { %336 = vmatmul.msk.bf16.vlgmr.msra.gmra.mxu0 %vm107_vm0, %v86_v4  ;;  %244 = vmatpush.bf16.msra.mxu3 %v395_v18  ;;  %v412_v43 = vld [vmem:[%s644_s9] ss:$0 sm:$0xff] }
  0x17   :  { %216 = vmatpush.bf16.msra.mxu2 %v397_v20  ;;  %300 = vmatpush.bf16.msrb.mxu0 %v402_v30 }
  0x18   :  { %174 = vmatpush.bf16.msra.mxu1 %v392_v7 }
  0x1b   :  { %301 = vmatpush.bf16.msrb.mxu0 %v401_v31 }
  0x1c   :  { %175 = vmatpush.bf16.msra.mxu1 %v391_v8 }
  0x1f   :  { %302 = vmatpush.bf16.msrb.mxu0 %v400_v32 }
  0x23   :  { %303 = vmatpush.bf16.msrb.mxu0 %v399_v33 }
  0x93   :  { %v120_v9 = vpop.f32.mrf.mxu0 }
  0x94   :  { %v121_v11 = vadd.f32 %v409_v10, %v120_v9 }
  0x96   :  { %v125_v14 = vmax.f32 %v121_v11, 0.0 }
  0x9b   :  { %v122_v12 = vpop.f32.mrf.mxu0 }
  0x9c   :  { %v123_v13 = vadd.f32 %v409_v10, %v122_v12 }
  0x9e   :  { %v126_v15 = vmax.f32 %v123_v13, 0.0 }
  0xa0   :  { %v127_v16 = vpack.c.bf16 %v126_v15, %v125_v14 }
  0xa2   :  { %353 = vmatmul.msk.bf16.vlgmr.msra.gmra.mxu1 %vm164_vm1, %v127_v16 }
 0x11f   :  { %v177_v22 = vpop.f32.mrf.mxu1 }
 0x120   :  { %v178_v23 = vadd.f32 %v410_v21, %v177_v22 }
 0x122   :  { %v182_v24 = vmax.f32 %v178_v23, 0.0 }
 0x124   :  { %v184_v25 = vpack.c.bf16 %v182_v24, %v182_v24 }
 0x126   :  { %371 = vmatmul.msk.bf16.vlgmr.msra.gmra.mxu3 %vm107_vm0, %v184_v25 }
 0x127   :  { %v179_v26 = vpop.f32.mrf.mxu1 }
 0x128   :  { %v180_v27 = vadd.f32 %v410_v21, %v179_v26 }
 0x12a   :  { %v183_v28 = vmax.f32 %v180_v27, 0.0 }
 0x12c   :  { %v185_v29 = vpack.c.bf16 %v183_v28, %v183_v28 }
 0x12e   :  { %362 = vmatmul.msk.bf16.vlgmr.msra.gmra.mxu2 %vm107_vm0, %v185_v29 }
 0x1a9   :  { %v246_v34 = vpop.f32.mrf.mxu3 }
 0x1b1   :  { %v218_v36 = vpop.f32.mrf.mxu2  ;;  %v248_v37 = vpop.f32.mrf.mxu3 }
 0x1b2   :  { %v247_v38 = vadd.f32 %v246_v34, %v218_v36 }
 0x1b4   :  { %v254_v39 = vadd.f32 %v411_v35, %v247_v38 }
 0x1b6   :  { %v255_v40 = vmax.f32 %v254_v39, 0.0 }
 0x1b8   :  { %v256_v41 = vpack.c.bf16 %v255_v40, %v255_v40 }
 0x1b9   :  { %v220_v42 = vpop.f32.mrf.mxu2 }
 0x1ba   :  { %388 = vmatmul.msk.bf16.vlgmr.msrb.gmra.mxu0 %vm164_vm1, %v256_v41 }
 0x237   :  { %v305_v44 = vpop.f32.mrf.mxu0 }
 0x238   :  { %v306_v45 = vadd.f32 %v412_v43, %v305_v44 }
 0x23a   :  { %309 = vst [vmem:[#allocation8] sm:$0xff] %v306_v45 }
 0x23b   :  { %320 = dma.vmem_to_hbm [thread:$0]  %s316_s29, 128, %s318_s6, [#allocation4]  }
 0x23f   :  { %v307_v46 = vpop.f32.mrf.mxu0 }
 0x240   :  { %513 = dma.done.wait [#allocation4], 128  }
 0x241   :  { %514 = vsyncadd [#allocation4], 4294967168 }
 0x242   :  { %325 = vsyncpa [#allocation3], 1 }
 0x243   :  { %326 = vsyncpa [#allocation6], 1 }
 0x244   :  { %327 = vsyncpa [#allocation4], 1 }

</bundles_post_ra>
